<compile_context>
chip_gen: v6e
topology: v6e:2x2x1
jax: 0.10.0
libtpu: 0.0.40
codegen_flags: <defaults>
</compile_context>

<pallas_src>
import functools

import jax
import jax.numpy as jnp
from jax import lax
from jax.experimental import pallas as pl
from jax.experimental.pallas import tpu as pltpu

EPS = 1e-5

# MXU operand dtype (accumulation is always f32 via preferred_element_type).
# bf16 on all generations per the perf review; set to jnp.float32 for
# bit-strict f32 conv numerics.
MXU_DTYPE = jnp.bfloat16

# Scoped VMEM request: above the small per-chip defaults, and <= ~48 MiB so it
# also fits v7x's 64 MiB/TC physical VMEM (v5e/v6e have 128 MiB).
VMEM_LIMIT_BYTES = 48 * 1024 * 1024


# ---------------------------------------------------------------------------
# In-kernel helpers (all shapes static, all lane-dense)
# ---------------------------------------------------------------------------
def _conv3x3_rows(xb, t_ref, b_ref, H):
    """3x3 conv (pad=1, stride=1) of a block of images in lane-dense layout.

    xb:    (Bblk, H, W*Cin)  f32 activations, width-UNpadded.
    t_ref: (3*W*Cin, W*Cout) block-Toeplitz weights (width padding folded in).
    b_ref: (1, W*Cout)       bias tiled over W.
    Returns (Bblk*H, W*Cout) conv + bias as an f32 accumulator.
    """
    Bblk, _, WC = xb.shape
    M = Bblk * H
    z = jnp.zeros((Bblk, 1, WC), xb.dtype)
    # parts[kh][b, h, :] == input row (h + kh - 1) of image b (zero if OOB).
    parts = [
        jnp.concatenate([z, xb[:, :H - 1, :]], axis=1),   # kh = 0 -> row h-1
        xb,                                               # kh = 1 -> row h
        jnp.concatenate([xb[:, 1:, :], z], axis=1),       # kh = 2 -> row h+1
    ]
    if WC % 128 == 0:
        # Merged-K: one MXU dot with K = 3*W*C (lane concat is 128-aligned).
        a = jnp.concatenate(parts, axis=-1).reshape(M, 3 * WC).astype(MXU_DTYPE)
        acc = jnp.dot(a, t_ref[...], preferred_element_type=jnp.float32)
    else:
        # Fallback (e.g. W*Cin = 64): one dot per kernel row, f32 accumulate.
        acc = None
        for kh, p in enumerate(parts):
            a = p.reshape(M, WC).astype(MXU_DTYPE)
            d = jnp.dot(a, t_ref[pl.ds(kh * WC, WC), :],
                        preferred_element_type=jnp.float32)
            acc = d if acc is None else acc + d
    return acc + b_ref[...]


def _partial_stats(y):
    """Single-pass per-(w,c) partials [sum, sum of squares], reduced over rows."""
    s1 = jnp.sum(y, axis=0, keepdims=True)
    s2 = jnp.sum(y * y, axis=0, keepdims=True)
    return jnp.concatenate([s1, s2], axis=0)              # (2, W*C)


# ---------------------------------------------------------------------------
# Kernels
# ---------------------------------------------------------------------------
def conv1_kernel(x_ref, t_ref, b_ref, y_ref, stats_ref, *, H):
    # x_ref:     (Bblk, H, W*Cin)   lane-dense, width-unpadded input images
    # y_ref:     (Bblk, H, W*Cmid)  pre-BN conv1 output (lane-dense)
    # stats_ref: (1, 2, W*Cmid)     partial BN statistics [sum, sumsq]
    xb = x_ref[...].astype(jnp.float32)
    y = _conv3x3_rows(xb, t_ref, b_ref, H)                # (Bblk*H, W*Cmid) f32
    stats_ref[0] = _partial_stats(y)
    y_ref[...] = y.reshape(y_ref.shape)


def conv2_kernel(y1_ref, sc_ref, sh_ref, t_ref, b_ref, y_ref, stats_ref, *, H):
    # y1_ref:    (Bblk, H, W*Cmid)  pre-BN output of layer 1
    # sc_/sh_:   (1, W*Cmid)        folded BN1 scale / shift (tiled over W)
    # y_ref:     (Bblk, H, W*Cout)  pre-BN conv2 output (lane-dense)
    sc = sc_ref[...][None]                                # (1, 1, W*Cmid)
    sh = sh_ref[...][None]
    # Fused BN1 affine + ReLU in f32 (VPU); conv padding rows are rebuilt from
    # exact zeros inside _conv3x3_rows, so no border masking is needed.
    a = jnp.maximum(y1_ref[...] * sc + sh, 0.0)
    y = _conv3x3_rows(a, t_ref, b_ref, H)                 # (Bblk*H, W*Cout) f32
    stats_ref[0] = _partial_stats(y)
    y_ref[...] = y.reshape(y_ref.shape)


# ---------------------------------------------------------------------------
# Host-side helpers (weight preprocessing + tiny BN folds between kernels)
# ---------------------------------------------------------------------------
def _build_toeplitz(w_hwio, W):
    """HWIO (KH,KW,Cin,Cout) -> (KH*W*Cin, W*Cout) block-Toeplitz slab.

    Row kh*W*Cin + w'*Cin + ci, col w*Cout + co holds w[kh, w'-w+1, ci, co]
    (zero when w'-w+1 is outside [0,KW)), i.e. the width zero-padding of the
    conv is folded into the slab so activations stay width-unpadded and
    lane-dense.  Built with vectorized jnp (jit-friendly; no host loops).
    NOTE: memory / MAC count scale ~W per output column -- tile W (16..32) for
    large images and let Bblk supply MXU occupancy instead.
    """
    KH, KW, Cin, Cout = w_hwio.shape
    pad = (KW - 1) // 2                                   # ConvBlock uses padding=1, k=3
    wp = jnp.arange(W)                                    # input column w'
    wo = jnp.arange(W)                                    # output column w
    kw = jnp.arange(KW)
    onehot = (wp[None, :, None] == wo[None, None, :] + kw[:, None, None] - pad)
    onehot = onehot.astype(w_hwio.dtype)                  # (KW, W, W)
    t = jnp.einsum("kpw,hkio->hpiwo", onehot, w_hwio)     # (KH, W, Cin, W, Cout)
    return t.reshape(KH * W * Cin, W * Cout)


def _fold_bn(stats, gamma, beta, n, C, W):
    """Partial stats (nblk, 2, W*C) -> folded per-channel (scale, shift)."""
    s = jnp.sum(stats, axis=0).reshape(2, W, C).sum(axis=1)   # (2, C)
    mean = s[0] / n
    var = s[1] / n - mean * mean                              # biased variance
    scale = gamma * lax.rsqrt(var + EPS)
    shift = beta - mean * scale
    return scale, shift


def _pick_bblk(B, H):
    """Images per grid step: fill the MXU M dimension (Bblk*H ~ 256) while
    keeping >= 8 grid steps for pipelining / megacore when the batch allows."""
    cap = max(1, 256 // H)
    cands = [d for d in range(1, B + 1) if B % d == 0 and d <= cap]
    for d in sorted(cands, reverse=True):
        if B // d >= 8:
            return d
    # Small batches (e.g. the test shapes): favor MXU fill; there are not
    # enough images for deep pipelining anyway.
    return max(cands)


# ---------------------------------------------------------------------------
# ConvBlock forward
# ---------------------------------------------------------------------------
@jax.jit
def conv_block(x_nchw, params1, params2):
    """ConvBlock forward: two [Conv(3x3,pad=1) -> BN -> ReLU]; dropout p=0 no-op."""
    w1, b1, g1, be1 = params1
    w2, b2, g2, be2 = params2
    B, Cin, H, W = x_nchw.shape
    KH, KW, _, Cmid = w1.shape
    Cout = w2.shape[3]
    assert KH == 3 and KW == 3, "ConvBlock default kernel_size=3 (padding=1)"
    n = B * H * W

    bblk = _pick_bblk(B, H)
    nblk = B // bblk

    # NCHW -> lane-dense (B, H, W*Cin); no spatial padding (width padding is
    # folded into the Toeplitz, row padding rebuilt in-kernel).
    x2 = jnp.transpose(x_nchw, (0, 2, 3, 1)).reshape(B, H, W * Cin)

    t1 = _build_toeplitz(w1, W).astype(MXU_DTYPE)     # (3*W*Cin,  W*Cmid)
    t2 = _build_toeplitz(w2, W).astype(MXU_DTYPE)     # (3*W*Cmid, W*Cout)
    b1_t = jnp.tile(b1, W)[None, :]                   # (1, W*Cmid) f32
    b2_t = jnp.tile(b2, W)[None, :]                   # (1, W*Cout) f32

    cparams = pltpu.CompilerParams(
        dimension_semantics=("parallel",),            # batch-block grid -> both TCs
        vmem_limit_bytes=VMEM_LIMIT_BYTES,
    )

    # ---- pass 1: conv1 + bias, per-block partial BN stats -------------------
    y1, stats1 = pl.pallas_call(
        functools.partial(conv1_kernel, H=H),
        grid=(nblk,),
        in_specs=[
            pl.BlockSpec((bblk, H, W * Cin), lambda i: (i, 0, 0)),
            pl.BlockSpec((KH * W * Cin, W * Cmid), lambda i: (0, 0)),
            pl.BlockSpec((1, W * Cmid), lambda i: (0, 0)),
        ],
        out_specs=(
            pl.BlockSpec((bblk, H, W * Cmid), lambda i: (i, 0, 0)),
            pl.BlockSpec((1, 2, W * Cmid), lambda i: (i, 0, 0)),
        ),
        out_shape=(
            jax.ShapeDtypeStruct((B, H, W * Cmid), jnp.float32),
            jax.ShapeDtypeStruct((nblk, 2, W * Cmid), jnp.float32),
        ),
        compiler_params=cparams,
    )(x2, t1, b1_t)

    # Tiny global BN1 fold (a few hundred floats) in plain JAX.
    sc1, sh1 = _fold_bn(stats1, g1, be1, n, Cmid, W)
    sc1_t = jnp.tile(sc1, W)[None, :]                 # (1, W*Cmid)
    sh1_t = jnp.tile(sh1, W)[None, :]

    # ---- pass 2: fused BN1 + ReLU + conv2 + bias, partial BN2 stats ----------
    y2, stats2 = pl.pallas_call(
        functools.partial(conv2_kernel, H=H),
        grid=(nblk,),
        in_specs=[
            pl.BlockSpec((bblk, H, W * Cmid), lambda i: (i, 0, 0)),
            pl.BlockSpec((1, W * Cmid), lambda i: (0, 0)),
            pl.BlockSpec((1, W * Cmid), lambda i: (0, 0)),
            pl.BlockSpec((KH * W * Cmid, W * Cout), lambda i: (0, 0)),
            pl.BlockSpec((1, W * Cout), lambda i: (0, 0)),
        ],
        out_specs=(
            pl.BlockSpec((bblk, H, W * Cout), lambda i: (i, 0, 0)),
            pl.BlockSpec((1, 2, W * Cout), lambda i: (i, 0, 0)),
        ),
        out_shape=(
            jax.ShapeDtypeStruct((B, H, W * Cout), jnp.float32),
            jax.ShapeDtypeStruct((nblk, 2, W * Cout), jnp.float32),
        ),
        compiler_params=cparams,
    )(y1, sc1_t, sh1_t, t2, b2_t)

    sc2, sh2 = _fold_bn(stats2, g2, be2, n, Cout, W)

    # ---- final BN2 + ReLU in plain JAX, fused with the output relayout -------
    # (review: pure elementwise pass, not worth a third pallas launch)
    out = jnp.maximum(y2.reshape(B, H, W, Cout) * sc2 + sh2, 0.0)
    # Dropout p=0.0 is a no-op.
    return jnp.transpose(out, (0, 3, 1, 2))


# ---------------------------------------------------------------------------
# Params / reference / self-check
# ---------------------------------------------------------------------------
def init_conv_params(key, cin, cout, k=3):
    """Deterministic init mimicking PyTorch Conv2d defaults (+/- 1/sqrt(fan_in))."""
    kw_key, kb_key = jax.random.split(key)
    fan_in = cin * k * k
    bound = 1.0 / (fan_in ** 0.5)
    w = jax.random.uniform(kw_key, (k, k, cin, cout), jnp.float32, -bound, bound)
    b = jax.random.uniform(kb_key, (cout,), jnp.float32, -bound, bound)
    gamma = jnp.ones((cout,), jnp.float32)       # BatchNorm default weight
    beta = jnp.zeros((cout,), jnp.float32)       # BatchNorm default bias
    return w, b, gamma, beta


def _ref_layer(x_nhwc, w, b, gamma, beta):
    """Pure-JAX reference (Conv -> training-mode BN -> ReLU) with the same MXU
    operand precision as the kernel (bf16 operands, f32 accumulation)."""
    y = lax.conv_general_dilated(
        x_nhwc.astype(MXU_DTYPE), w.astype(MXU_DTYPE),
        window_strides=(1, 1), padding=((1, 1), (1, 1)),
        dimension_numbers=("NHWC", "HWIO", "NHWC"),
        preferred_element_type=jnp.float32) + b
    mean = jnp.mean(y, axis=(0, 1, 2))
    var = jnp.mean((y - mean) ** 2, axis=(0, 1, 2))
    y = (y - mean) * lax.rsqrt(var + EPS) * gamma + beta
    return jnp.maximum(y, 0.0)


if __name__ == "__main__":
    key = jax.random.PRNGKey(0)
    kx, k1, k2 = jax.random.split(key, 3)

    # Small shapes consistent with the module's 4D (B, C, H, W) input.
    B, Cin, H, W = 2, 4, 16, 16
    Cmid = Cout = 8                              # mid_channels defaults to out_channels

    x_nchw = jax.random.normal(kx, (B, Cin, H, W), jnp.float32)
    params1 = init_conv_params(k1, Cin, Cmid)
    params2 = init_conv_params(k2, Cmid, Cout)

    out = conv_block(x_nchw, params1, params2)
    out = jax.block_until_ready(out)
    assert out.shape == (B, Cout, H, W)

    # Correctness check against a matched-precision pure-JAX reference.
    x_nhwc = jnp.transpose(x_nchw, (0, 2, 3, 1))
    ref = _ref_layer(_ref_layer(x_nhwc, *params1), *params2)
    ref = jnp.transpose(ref, (0, 3, 1, 2))
    max_err = float(jnp.max(jnp.abs(out - ref)))
    assert jnp.allclose(out, ref, atol=2e-2, rtol=2e-2), f"mismatch {max_err}"

    print("KERNEL_OK")
</pallas_src>

<mosaic_0001>
module attributes {stable_mosaic.version = 11 : i64} {
  func.func @conv1_kernel(%arg0: i32, %arg1: memref<2x16x64xf32, #tpu.memory_space<vmem>>, %arg2: memref<192x128xbf16, #tpu.memory_space<vmem>>, %arg3: memref<1x128xf32, #tpu.memory_space<vmem>>, %arg4: memref<2x16x128xf32, #tpu.memory_space<vmem>>, %arg5: memref<1x2x128xf32, #tpu.memory_space<vmem>>) attributes {dimension_semantics = [#tpu.dimension_semantics<parallel>], iteration_bounds = array<i64: 1>, scalar_prefetch = 0 : i64, scratch_operands = 0 : i64, tpu.core_type = #tpu.core_type<tc>, window_params = [{transform_indices = @transform_0, window_bounds = array<i64: 2, 16, 64>}, {pipeline_mode = #tpu.pipeline_mode<synchronous>, transform_indices = @transform_1, window_bounds = array<i64: 192, 128>}, {pipeline_mode = #tpu.pipeline_mode<synchronous>, transform_indices = @transform_2, window_bounds = array<i64: 1, 128>}, {transform_indices = @transform_3, window_bounds = array<i64: 2, 16, 128>}, {transform_indices = @transform_4, window_bounds = array<i64: 1, 2, 128>}]} {
    %c0 = arith.constant 0 : index
    %c0_0 = arith.constant 0 : index
    %c0_1 = arith.constant 0 : index
    %0 = vector.load %arg1[%c0, %c0_0, %c0_1] : memref<2x16x64xf32, #tpu.memory_space<vmem>>, vector<2x16x64xf32>
    %cst = arith.constant 0.000000e+00 : f32
    %1 = vector.broadcast %cst : f32 to vector<2x1x64xf32>
    %2 = vector.extract_strided_slice %0 {offsets = [0, 0, 0], sizes = [2, 15, 64], strides = [1, 1, 1]} : vector<2x16x64xf32> to vector<2x15x64xf32>
    %3 = tpu.concatenate %1, %2 in 1 : vector<2x1x64xf32>, vector<2x15x64xf32> -> vector<2x16x64xf32>
    %4 = vector.extract_strided_slice %0 {offsets = [0, 1, 0], sizes = [2, 15, 64], strides = [1, 1, 1]} : vector<2x16x64xf32> to vector<2x15x64xf32>
    %5 = tpu.concatenate %4, %1 in 1 : vector<2x15x64xf32>, vector<2x1x64xf32> -> vector<2x16x64xf32>
    %6 = vector.shape_cast %3 : vector<2x16x64xf32> to vector<32x64xf32>
    %7 = arith.truncf %6 : vector<32x64xf32> to vector<32x64xbf16>
    %c0_2 = arith.constant 0 : index
    %c0_3 = arith.constant 0 : index
    %8 = vector.load %arg2[%c0_2, %c0_3] : memref<192x128xbf16, #tpu.memory_space<vmem>>, vector<64x128xbf16>
    %cst_4 = arith.constant dense<0.000000e+00> : vector<32x128xf32>
    %9 = tpu.matmul %7, %8, %cst_4 {dimension_numbers = #tpu.dot_dimension_numbers<[1], [0], [0], [1], [0, 0, 1, 1], [], []>} : vector<32x64xbf16>, vector<64x128xbf16>, vector<32x128xf32> -> vector<32x128xf32>
    %10 = vector.shape_cast %0 : vector<2x16x64xf32> to vector<32x64xf32>
    %11 = arith.truncf %10 : vector<32x64xf32> to vector<32x64xbf16>
    %c64 = arith.constant 64 : index
    %c0_5 = arith.constant 0 : index
    %12 = vector.load %arg2[%c64, %c0_5] : memref<192x128xbf16, #tpu.memory_space<vmem>>, vector<64x128xbf16>
    %cst_6 = arith.constant dense<0.000000e+00> : vector<32x128xf32>
    %13 = tpu.matmul %11, %12, %cst_6 {dimension_numbers = #tpu.dot_dimension_numbers<[1], [0], [0], [1], [0, 0, 1, 1], [], []>} : vector<32x64xbf16>, vector<64x128xbf16>, vector<32x128xf32> -> vector<32x128xf32>
    %14 = arith.addf %9, %13 : vector<32x128xf32>
    %15 = vector.shape_cast %5 : vector<2x16x64xf32> to vector<32x64xf32>
    %16 = arith.truncf %15 : vector<32x64xf32> to vector<32x64xbf16>
    %c128 = arith.constant 128 : index
    %c0_7 = arith.constant 0 : index
    %17 = vector.load %arg2[%c128, %c0_7] : memref<192x128xbf16, #tpu.memory_space<vmem>>, vector<64x128xbf16>
    %cst_8 = arith.constant dense<0.000000e+00> : vector<32x128xf32>
    %18 = tpu.matmul %16, %17, %cst_8 {dimension_numbers = #tpu.dot_dimension_numbers<[1], [0], [0], [1], [0, 0, 1, 1], [], []>} : vector<32x64xbf16>, vector<64x128xbf16>, vector<32x128xf32> -> vector<32x128xf32>
    %19 = arith.addf %14, %18 : vector<32x128xf32>
    %c0_9 = arith.constant 0 : index
    %c0_10 = arith.constant 0 : index
    %20 = vector.load %arg3[%c0_9, %c0_10] : memref<1x128xf32, #tpu.memory_space<vmem>>, vector<1x128xf32>
    %21 = vector.broadcast %20 : vector<1x128xf32> to vector<32x128xf32>
    %22 = arith.addf %19, %21 : vector<32x128xf32>
    %cst_11 = arith.constant dense<0.000000e+00> : vector<128xf32>
    %23 = vector.multi_reduction <add>, %22, %cst_11 [0] : vector<32x128xf32> to vector<128xf32>
    %24 = vector.shape_cast %23 : vector<128xf32> to vector<1x128xf32>
    %25 = arith.mulf %22, %22 : vector<32x128xf32>
    %cst_12 = arith.constant dense<0.000000e+00> : vector<128xf32>
    %26 = vector.multi_reduction <add>, %25, %cst_12 [0] : vector<32x128xf32> to vector<128xf32>
    %27 = vector.shape_cast %26 : vector<128xf32> to vector<1x128xf32>
    %28 = tpu.concatenate %24, %27 in 0 : vector<1x128xf32>, vector<1x128xf32> -> vector<2x128xf32>
    %c0_13 = arith.constant 0 : index
    %c0_14 = arith.constant 0 : index
    %c0_15 = arith.constant 0 : index
    %29 = vector.load %arg5[%c0_13, %c0_14, %c0_15] : memref<1x2x128xf32, #tpu.memory_space<vmem>>, vector<1x2x128xf32>
    %30 = vector.shape_cast %29 : vector<1x2x128xf32> to vector<2x128xf32>
    %31 = vector.shape_cast %28 : vector<2x128xf32> to vector<1x2x128xf32>
    tpu.vector_store %arg5[%c0_13, %c0_14, %c0_15], %31 {strides = array<i32>} : memref<1x2x128xf32, #tpu.memory_space<vmem>>, vector<1x2x128xf32>,
    %32 = vector.shape_cast %22 : vector<32x128xf32> to vector<2x16x128xf32>
    %c0_16 = arith.constant 0 : index
    %c0_17 = arith.constant 0 : index
    %c0_18 = arith.constant 0 : index
    %33 = vector.load %arg4[%c0_16, %c0_17, %c0_18] : memref<2x16x128xf32, #tpu.memory_space<vmem>>, vector<2x16x128xf32>
    tpu.vector_store %arg4[%c0_16, %c0_17, %c0_18], %32 {strides = array<i32>} : memref<2x16x128xf32, #tpu.memory_space<vmem>>, vector<2x16x128xf32>,
    return
  }
  func.func @transform_0(%arg0: i32) -> (i32, i32, i32) {
    %c0_i32 = arith.constant 0 : i32
    %c0_i32_0 = arith.constant 0 : i32
    %c0_i32_1 = arith.constant 0 : i32
    return %arg0, %c0_i32, %c0_i32_0 : i32, i32, i32
  }
  func.func @transform_1(%arg0: i32) -> (i32, i32) {
    %c0_i32 = arith.constant 0 : i32
    %c0_i32_0 = arith.constant 0 : i32
    %c0_i32_1 = arith.constant 0 : i32
    return %c0_i32, %c0_i32_0 : i32, i32
  }
  func.func @transform_2(%arg0: i32) -> (i32, i32) {
    %c0_i32 = arith.constant 0 : i32
    %c0_i32_0 = arith.constant 0 : i32
    %c0_i32_1 = arith.constant 0 : i32
    return %c0_i32, %c0_i32_0 : i32, i32
  }
  func.func @transform_3(%arg0: i32) -> (i32, i32, i32) {
    %c0_i32 = arith.constant 0 : i32
    %c0_i32_0 = arith.constant 0 : i32
    %c0_i32_1 = arith.constant 0 : i32
    return %arg0, %c0_i32, %c0_i32_0 : i32, i32, i32
  }
  func.func @transform_4(%arg0: i32) -> (i32, i32, i32) {
    %c0_i32 = arith.constant 0 : i32
    %c0_i32_0 = arith.constant 0 : i32
    %c0_i32_1 = arith.constant 0 : i32
    return %arg0, %c0_i32, %c0_i32_0 : i32, i32, i32
  }
}

module attributes {stable_mosaic.version = 11 : i64} {
  func.func @conv2_kernel(%arg0: i32, %arg1: memref<2x16x128xf32, #tpu.memory_space<vmem>>, %arg2: memref<1x128xf32, #tpu.memory_space<vmem>>, %arg3: memref<1x128xf32, #tpu.memory_space<vmem>>, %arg4: memref<384x128xbf16, #tpu.memory_space<vmem>>, %arg5: memref<1x128xf32, #tpu.memory_space<vmem>>, %arg6: memref<2x16x128xf32, #tpu.memory_space<vmem>>, %arg7: memref<1x2x128xf32, #tpu.memory_space<vmem>>) attributes {dimension_semantics = [#tpu.dimension_semantics<parallel>], iteration_bounds = array<i64: 1>, scalar_prefetch = 0 : i64, scratch_operands = 0 : i64, tpu.core_type = #tpu.core_type<tc>, window_params = [{transform_indices = @transform_0, window_bounds = array<i64: 2, 16, 128>}, {pipeline_mode = #tpu.pipeline_mode<synchronous>, transform_indices = @transform_1, window_bounds = array<i64: 1, 128>}, {pipeline_mode = #tpu.pipeline_mode<synchronous>, transform_indices = @transform_2, window_bounds = array<i64: 1, 128>}, {pipeline_mode = #tpu.pipeline_mode<synchronous>, transform_indices = @transform_3, window_bounds = array<i64: 384, 128>}, {pipeline_mode = #tpu.pipeline_mode<synchronous>, transform_indices = @transform_4, window_bounds = array<i64: 1, 128>}, {transform_indices = @transform_5, window_bounds = array<i64: 2, 16, 128>}, {transform_indices = @transform_6, window_bounds = array<i64: 1, 2, 128>}]} {
    %c0 = arith.constant 0 : index
    %c0_0 = arith.constant 0 : index
    %0 = vector.load %arg2[%c0, %c0_0] : memref<1x128xf32, #tpu.memory_space<vmem>>, vector<1x128xf32>
    %1 = vector.shape_cast %0 : vector<1x128xf32> to vector<1x1x128xf32>
    %c0_1 = arith.constant 0 : index
    %c0_2 = arith.constant 0 : index
    %2 = vector.load %arg3[%c0_1, %c0_2] : memref<1x128xf32, #tpu.memory_space<vmem>>, vector<1x128xf32>
    %3 = vector.shape_cast %2 : vector<1x128xf32> to vector<1x1x128xf32>
    %c0_3 = arith.constant 0 : index
    %c0_4 = arith.constant 0 : index
    %c0_5 = arith.constant 0 : index
    %4 = vector.load %arg1[%c0_3, %c0_4, %c0_5] : memref<2x16x128xf32, #tpu.memory_space<vmem>>, vector<2x16x128xf32>
    %5 = vector.broadcast %1 : vector<1x1x128xf32> to vector<2x16x128xf32>
    %6 = arith.mulf %4, %5 : vector<2x16x128xf32>
    %7 = vector.broadcast %3 : vector<1x1x128xf32> to vector<2x16x128xf32>
    %8 = arith.addf %6, %7 : vector<2x16x128xf32>
    %cst = arith.constant 0.000000e+00 : f32
    %9 = vector.broadcast %cst : f32 to vector<2x16x128xf32>
    %10 = arith.maximumf %8, %9 : vector<2x16x128xf32>
    %cst_6 = arith.constant 0.000000e+00 : f32
    %11 = vector.broadcast %cst_6 : f32 to vector<2x1x128xf32>
    %12 = vector.extract_strided_slice %10 {offsets = [0, 0, 0], sizes = [2, 15, 128], strides = [1, 1, 1]} : vector<2x16x128xf32> to vector<2x15x128xf32>
    %13 = tpu.concatenate %11, %12 in 1 : vector<2x1x128xf32>, vector<2x15x128xf32> -> vector<2x16x128xf32>
    %14 = vector.extract_strided_slice %10 {offsets = [0, 1, 0], sizes = [2, 15, 128], strides = [1, 1, 1]} : vector<2x16x128xf32> to vector<2x15x128xf32>
    %15 = tpu.concatenate %14, %11 in 1 : vector<2x15x128xf32>, vector<2x1x128xf32> -> vector<2x16x128xf32>
    %16 = tpu.concatenate %13, %10, %15 in 2 : vector<2x16x128xf32>, vector<2x16x128xf32>, vector<2x16x128xf32> -> vector<2x16x384xf32>
    %17 = vector.shape_cast %16 : vector<2x16x384xf32> to vector<32x384xf32>
    %18 = arith.truncf %17 : vector<32x384xf32> to vector<32x384xbf16>
    %c0_7 = arith.constant 0 : index
    %c0_8 = arith.constant 0 : index
    %19 = vector.load %arg4[%c0_7, %c0_8] : memref<384x128xbf16, #tpu.memory_space<vmem>>, vector<384x128xbf16>
    %cst_9 = arith.constant dense<0.000000e+00> : vector<32x128xf32>
    %20 = tpu.matmul %18, %19, %cst_9 {dimension_numbers = #tpu.dot_dimension_numbers<[1], [0], [0], [1], [0, 0, 1, 1], [], []>} : vector<32x384xbf16>, vector<384x128xbf16>, vector<32x128xf32> -> vector<32x128xf32>
    %c0_10 = arith.constant 0 : index
    %c0_11 = arith.constant 0 : index
    %21 = vector.load %arg5[%c0_10, %c0_11] : memref<1x128xf32, #tpu.memory_space<vmem>>, vector<1x128xf32>
    %22 = vector.broadcast %21 : vector<1x128xf32> to vector<32x128xf32>
    %23 = arith.addf %20, %22 : vector<32x128xf32>
    %cst_12 = arith.constant dense<0.000000e+00> : vector<128xf32>
    %24 = vector.multi_reduction <add>, %23, %cst_12 [0] : vector<32x128xf32> to vector<128xf32>
    %25 = vector.shape_cast %24 : vector<128xf32> to vector<1x128xf32>
    %26 = arith.mulf %23, %23 : vector<32x128xf32>
    %cst_13 = arith.constant dense<0.000000e+00> : vector<128xf32>
    %27 = vector.multi_reduction <add>, %26, %cst_13 [0] : vector<32x128xf32> to vector<128xf32>
    %28 = vector.shape_cast %27 : vector<128xf32> to vector<1x128xf32>
    %29 = tpu.concatenate %25, %28 in 0 : vector<1x128xf32>, vector<1x128xf32> -> vector<2x128xf32>
    %c0_14 = arith.constant 0 : index
    %c0_15 = arith.constant 0 : index
    %c0_16 = arith.constant 0 : index
    %30 = vector.load %arg7[%c0_14, %c0_15, %c0_16] : memref<1x2x128xf32, #tpu.memory_space<vmem>>, vector<1x2x128xf32>
    %31 = vector.shape_cast %30 : vector<1x2x128xf32> to vector<2x128xf32>
    %32 = vector.shape_cast %29 : vector<2x128xf32> to vector<1x2x128xf32>
    tpu.vector_store %arg7[%c0_14, %c0_15, %c0_16], %32 {strides = array<i32>} : memref<1x2x128xf32, #tpu.memory_space<vmem>>, vector<1x2x128xf32>,
    %33 = vector.shape_cast %23 : vector<32x128xf32> to vector<2x16x128xf32>
    %c0_17 = arith.constant 0 : index
    %c0_18 = arith.constant 0 : index
    %c0_19 = arith.constant 0 : index
    %34 = vector.load %arg6[%c0_17, %c0_18, %c0_19] : memref<2x16x128xf32, #tpu.memory_space<vmem>>, vector<2x16x128xf32>
    tpu.vector_store %arg6[%c0_17, %c0_18, %c0_19], %33 {strides = array<i32>} : memref<2x16x128xf32, #tpu.memory_space<vmem>>, vector<2x16x128xf32>,
    return
  }
  func.func @transform_0(%arg0: i32) -> (i32, i32, i32) {
    %c0_i32 = arith.constant 0 : i32
    %c0_i32_0 = arith.constant 0 : i32
    %c0_i32_1 = arith.constant 0 : i32
    return %arg0, %c0_i32, %c0_i32_0 : i32, i32, i32
  }
  func.func @transform_1(%arg0: i32) -> (i32, i32) {
    %c0_i32 = arith.constant 0 : i32
    %c0_i32_0 = arith.constant 0 : i32
    %c0_i32_1 = arith.constant 0 : i32
    return %c0_i32, %c0_i32_0 : i32, i32
  }
  func.func @transform_2(%arg0: i32) -> (i32, i32) {
    %c0_i32 = arith.constant 0 : i32
    %c0_i32_0 = arith.constant 0 : i32
    %c0_i32_1 = arith.constant 0 : i32
    return %c0_i32, %c0_i32_0 : i32, i32
  }
  func.func @transform_3(%arg0: i32) -> (i32, i32) {
    %c0_i32 = arith.constant 0 : i32
    %c0_i32_0 = arith.constant 0 : i32
    %c0_i32_1 = arith.constant 0 : i32
    return %c0_i32, %c0_i32_0 : i32, i32
  }
  func.func @transform_4(%arg0: i32) -> (i32, i32) {
    %c0_i32 = arith.constant 0 : i32
    %c0_i32_0 = arith.constant 0 : i32
    %c0_i32_1 = arith.constant 0 : i32
    return %c0_i32, %c0_i32_0 : i32, i32
  }
  func.func @transform_5(%arg0: i32) -> (i32, i32, i32) {
    %c0_i32 = arith.constant 0 : i32
    %c0_i32_0 = arith.constant 0 : i32
    %c0_i32_1 = arith.constant 0 : i32
    return %arg0, %c0_i32, %c0_i32_0 : i32, i32, i32
  }
  func.func @transform_6(%arg0: i32) -> (i32, i32, i32) {
    %c0_i32 = arith.constant 0 : i32
    %c0_i32_0 = arith.constant 0 : i32
    %c0_i32_1 = arith.constant 0 : i32
    return %arg0, %c0_i32, %c0_i32_0 : i32, i32, i32
  }
}

</mosaic_0001>

<bundles_post_ra>
// kernel: tile.23
= control target key start
LH: loop header
LB: loop body
LE: loop exit
PB: predicated region body
PF: predicated region fallthrough
CT: control target
= control target key end

     0   :  { %s28_s0 = inlined_call_operand.vmem [shape: f32[8], index: 0, kind: input, shape index: {}]   ;;  %s29_s1 = inlined_call_operand.vmem [shape: f32[16,8], index: 1, kind: output, shape index: {}]  }
   0x1   :  { %v4_v0 = vld [vmem:[%s28_s0] ss:$0 sm:$0xff] }
   0x2   :  { %5 = vst [vmem:[%s29_s1] sm:$0xff] %v4_v0  ;;  %8 = vst [vmem:[%s29_s1 + $0x8] sm:$0xff] %v4_v0 }

// kernel: tile.24
= control target key start
LH: loop header
LB: loop body
LE: loop exit
PB: predicated region body
PF: predicated region fallthrough
CT: control target
= control target key end

     0   :  { %s133_s10 = smov 120   ;;  %s134_s11 = smov 104   ;;  %vm3_vm0 = vcmask 64512   ;;  %vm9_vm1 = vcmask 1048512   ;;  %vm15_vm2 = vcmask 982912   ;;  %vm21_vm3 = vcmask 917312   ;;  %s209_s0 = inlined_call_operand.vmem [shape: f32[16,8], index: 0, kind: input, shape index: {}]   ;;  %s210_s1 = inlined_call_operand.vmem [shape: f32[1,128], index: 1, kind: output, shape index: {}]  }
   0x1   :  { %v103_v0 = vld [vmem:[%s209_s0 + $0xf] sm:$0x1]   ;;  %v105_v1 = vld [vmem:[%s209_s0 + $0xd] sm:$0x1]   ;;  %v104_v2 = vld [vmem:[%s209_s0 + $0xe] sm:$0x1]  }
   0x2   :  { %7 = vrot.lane.b32.xlu0 %v103_v0, %s133_s10  ;;  %19 = vrot.lane.b32.xlu1 %v105_v1, %s134_s11  ;;  %v106_v3 = vld [vmem:[%s209_s0 + $0xc] sm:$0x1]   ;;  %s135_s16 = smov 112   ;;  %s136_s17 = smov 96   ;;  %v107_v4 = vld [vmem:[%s209_s0 + $0xb] sm:$0x1]  }
   0x3   :  { %v108_v5 = vld [vmem:[%s209_s0 + $0xa] sm:$0x1]   ;;  %v2_v6 = vld [vmem:[%s209_s0] sm:$0x1]   ;;  %s137_s24 = smov 88   ;;  %s138_s25 = smov 80  }
   0x4   :  { %4 = vst.msk [vmem:[#allocation0] sm:$0x1] %vm3_vm0, %v2_v6   ;;  %v109_v7 = vld [vmem:[%s209_s0 + $0x9] sm:$0x1]   ;;  %v110_v8 = vld [vmem:[%s209_s0 + $0x8] sm:$0x1]  }
   0x5   :  { %s139_s30 = smov 72   ;;  %s140_s2 = smov 64   ;;  %v111_v9 = vld [vmem:[%s209_s0 + $0x7] sm:$0x1]   ;;  %v112_v10 = vld [vmem:[%s209_s0 + $0x6] sm:$0x1]  }
   0x6   :  { %13 = vrot.lane.b32.xlu0 %v104_v2, %s135_s16  ;;  %25 = vrot.lane.b32.xlu1 %v106_v3, %s136_s17  ;;  %s141_s7 = smov 56   ;;  %s142_s8 = smov 48   ;;  %v113_v11 = vld [vmem:[%s209_s0 + $0x5] sm:$0x1]   ;;  %v114_v12 = vld [vmem:[%s209_s0 + $0x4] sm:$0x1]  }
   0x7   :  { %s143_s13 = smov 40   ;;  %s144_s14 = smov 32   ;;  %v115_v13 = vld [vmem:[%s209_s0 + $0x3] sm:$0x1]   ;;  %v116_v14 = vld [vmem:[%s209_s0 + $0x2] sm:$0x1]  }
   0x8   :  { %s145_s19 = smov 24   ;;  %s146_s20 = smov 16   ;;  %v117_v15 = vld [vmem:[%s209_s0 + $0x1] sm:$0x1]   ;;  %vm27_vm4 = vcmask 851712   ;;  %vm33_vm5 = vcmask 786112  }
   0x9   :  { %s147_s0 = smov 8   ;;  %vm39_vm6 = vcmask 720512   ;;  %vm45_vm7 = vcmask 654912   ;;  %vm51_vm8 = vcmask 589312   ;;  %vm57_vm9 = vcmask 523712  }
   0xa   :  { %31 = vrot.lane.b32.xlu0 %v107_v4, %s137_s24  ;;  %37 = vrot.lane.b32.xlu1 %v108_v5, %s138_s25  ;;  %vm63_vm10 = vcmask 458112   ;;  %vm69_vm11 = vcmask 392512   ;;  %vm75_vm12 = vcmask 326912   ;;  %vm81_vm13 = vcmask 261312  }
   0xb   :  { %vm87_vm14 = vcmask 195712   ;;  %vm93_vm15 = vcmask 130112  }
   0xe   :  { %43 = vrot.lane.b32.xlu0 %v109_v7, %s139_s30  ;;  %49 = vrot.lane.b32.xlu1 %v110_v8, %s140_s2 }
  0x12   :  { %55 = vrot.lane.b32.xlu0 %v111_v9, %s141_s7  ;;  %61 = vrot.lane.b32.xlu1 %v112_v10, %s142_s8 }
  0x16   :  { %67 = vrot.lane.b32.xlu0 %v113_v11, %s143_s13  ;;  %73 = vrot.lane.b32.xlu1 %v114_v12, %s144_s14 }
  0x1a   :  { %79 = vrot.lane.b32.xlu0 %v115_v13, %s145_s19  ;;  %85 = vrot.lane.b32.xlu1 %v116_v14, %s146_s20 }
  0x1e   :  { %91 = vrot.lane.b32.xlu0 %v117_v15, %s147_s0 }
  0x74   :  { %v8_v16 = vpop.permute.xlu0 %7   ;;  %v20_v17 = vpop.permute.xlu1 %19  }
  0x75   :  { %10 = vst.msk [vmem:[#allocation0] sm:$0x1] %vm9_vm1, %v8_v16  }
  0x78   :  { %v14_v18 = vpop.permute.xlu0 %13   ;;  %v26_v19 = vpop.permute.xlu1 %25  }
  0x79   :  { %16 = vst.msk [vmem:[#allocation0] sm:$0x1] %vm15_vm2, %v14_v18  }
  0x7a   :  { %22 = vst.msk [vmem:[#allocation0] sm:$0x1] %vm21_vm3, %v20_v17  }
  0x7b   :  { %28 = vst.msk [vmem:[#allocation0] sm:$0x1] %vm27_vm4, %v26_v19  }
  0x7c   :  { %v32_v20 = vpop.permute.xlu0 %31   ;;  %v38_v21 = vpop.permute.xlu1 %37  }
  0x7d   :  { %34 = vst.msk [vmem:[#allocation0] sm:$0x1] %vm33_vm5, %v32_v20  }
  0x7e   :  { %40 = vst.msk [vmem:[#allocation0] sm:$0x1] %vm39_vm6, %v38_v21  }
  0x80   :  { %v44_v22 = vpop.permute.xlu0 %43   ;;  %v50_v23 = vpop.permute.xlu1 %49  }
  0x81   :  { %46 = vst.msk [vmem:[#allocation0] sm:$0x1] %vm45_vm7, %v44_v22  }
  0x82   :  { %52 = vst.msk [vmem:[#allocation0] sm:$0x1] %vm51_vm8, %v50_v23  }
  0x84   :  { %v56_v24 = vpop.permute.xlu0 %55   ;;  %v62_v25 = vpop.permute.xlu1 %61  }
  0x85   :  { %58 = vst.msk [vmem:[#allocation0] sm:$0x1] %vm57_vm9, %v56_v24  }
  0x86   :  { %64 = vst.msk [vmem:[#allocation0] sm:$0x1] %vm63_vm10, %v62_v25  }
  0x88   :  { %v68_v26 = vpop.permute.xlu0 %67   ;;  %v74_v27 = vpop.permute.xlu1 %73  }
  0x89   :  { %70 = vst.msk [vmem:[#allocation0] sm:$0x1] %vm69_vm11, %v68_v26  }
  0x8a   :  { %76 = vst.msk [vmem:[#allocation0] sm:$0x1] %vm75_vm12, %v74_v27  }
  0x8c   :  { %v80_v28 = vpop.permute.xlu0 %79   ;;  %v86_v29 = vpop.permute.xlu1 %85  }
  0x8d   :  { %82 = vst.msk [vmem:[#allocation0] sm:$0x1] %vm81_vm13, %v80_v28  }
  0x8e   :  { %88 = vst.msk [vmem:[#allocation0] sm:$0x1] %vm87_vm14, %v86_v29  }
  0x90   :  { %v92_v30 = vpop.permute.xlu0 %91  }
  0x91   :  { %94 = vst.msk [vmem:[#allocation0] sm:$0x1] %vm93_vm15, %v92_v30  }
  0x98   :  { %v99_v31 = vld [vmem:[#allocation0] sm:$0x1] }
  0x99   :  { %102 = vst [vmem:[%s210_s1] sm:$0x1] %v99_v31 }

// kernel: conv_block.2
= control target key start
LH: loop header
LB: loop body
LE: loop exit
PB: predicated region body
PF: predicated region fallthrough
CT: control target
= control target key end

     0   :  { %vm38_vm0 = vcmask 1046528   ;;  %vm95_vm1 = vcmask 523264   ;;  %vm25_vm2 = vcmask 1040384   ;;  %s561_s1 = inlined_call_operand.vmem [shape: bf16[192,128], index: 1, kind: input, shape index: {}]   ;;  %s562_s0 = inlined_call_operand.vmem [shape: f32[2,16,64], index: 0, kind: input, shape index: {}]   ;;  %s563_s2 = inlined_call_operand.vmem [shape: f32[1,128], index: 2, kind: input, shape index: {}]   ;;  %s564_s3 = inlined_call_operand.vmem [shape: f32[2,16,128], index: 3, kind: output, shape index: {0}]   ;;  %s565_s4 = inlined_call_operand.vmem [shape: f32[1,2,128], index: 4, kind: output, shape index: {1}]  }
   0x1   :  { %v443_v0 = vld [vmem:[%s561_s1 + $0x38] sm:$0xff]   ;;  %v445_v2 = vld [vmem:[%s561_s1 + $0x30] sm:$0xff]   ;;  %v447_v4 = vld [vmem:[%s561_s1 + $0x28] sm:$0xff]  }
   0x2   :  { %v444_v1 = vld [vmem:[%s561_s1 + $0x18] sm:$0xff]   ;;  %407 = vmatprep.subr.bf16.mxu0 %v443_v0  ;;  %v446_v3 = vld [vmem:[%s561_s1 + $0x10] sm:$0xff]   ;;  %v448_v5 = vld [vmem:[%s561_s1 + $0x8] sm:$0xff]  }
   0x3   :  { %419 = vmatprep.subr.bf16.mxu1 %v444_v1  ;;  %408 = vmatpush3.bf16.msra.mxu0 %v443_v0  ;;  %v449_v6 = vld [vmem:[%s561_s1 + $0x20] sm:$0xff]   ;;  %v18_v9 = vld [vmem:[%s562_s0 + $0x8] sm:$0xff]  ;;  %v19_v10 = vld [vmem:[%s562_s0 + $0x10] sm:$0xff] }
   0x4   :  { %420 = vmatpush3.bf16.msra.mxu1 %v444_v1  ;;  %409 = vmatprep.subr.bf16.mxu0 %v445_v2  ;;  %v450_v7 = vld [vmem:[%s561_s1] sm:$0xff]   ;;  %v27_v11 = vrot.slane %v18_v9, 7  ;;  %v40_v13 = vrot.slane %v18_v9, 1  ;;  %v20_v15 = vld [vmem:[%s562_s0 + $0x18] sm:$0xff]  ;;  %v29_v19 = vrot.slane %v19_v10, 7  ;;  %v452_v29 = vld [vmem:[%s561_s1 + $0x50] sm:$0xff]  }
   0x5   :  { %421 = vmatprep.subr.bf16.mxu1 %v446_v3  ;;  %v17_v8 = vld [vmem:[%s562_s0] sm:$0xff]  ;;  %v30_v17 = vrot.slane %v20_v15, 7  ;;  %v451_v22 = vld [vmem:[%s561_s1 + $0x58] sm:$0xff]   ;;  %v62_v27 = vpack.c.bf16 %v20_v15, %v19_v10  ;;  %v453_v31 = vld [vmem:[%s561_s1 + $0x48] sm:$0xff]   ;;  %v42_v32 = vrot.slane %v19_v10, 1  ;;  %v43_v33 = vrot.slane %v20_v15, 1 }
   0x6   :  { %v39_v12 = vrot.slane %v17_v8, 1  ;;  %v61_v14 = vpack.c.bf16 %v18_v9, %v17_v8  ;;  %v26_v16 = vrot.slane %v17_v8, 7  ;;  %v49_v18 = vsel %vm38_vm0, %v40_v13, 0.0  ;;  %v454_v34 = vld [vmem:[%s561_s1 + $0x40] sm:$0xff]  }
   0x7   :  { %410 = vmatpush3.bf16.msra.mxu0 %v445_v2  ;;  %v31_v24 = vsel %vm25_vm2, %v29_v19, %v30_v17  ;;  %v37_v25 = vsel %vm25_vm2, 0.0, %v29_v19  ;;  %v44_v35 = vsel %vm38_vm0, %v42_v32, %v43_v33  ;;  %v50_v36 = vsel %vm38_vm0, %v43_v33, 0.0  ;;  %v388_v47 = vld [vmem:[%s563_s2] ss:$0 sm:$0xff] }
   0x8   :  { %422 = vmatpush3.bf16.msra.mxu1 %v446_v3  ;;  %411 = vmatprep.subr.bf16.mxu0 %v447_v4  ;;  %v28_v20 = vsel %vm25_vm2, %v26_v16, %v27_v11  ;;  %v36_v21 = vsel %vm25_vm2, 0.0, %v26_v16  ;;  %v41_v26 = vsel %vm38_vm0, %v39_v12, %v40_v13  ;;  %v52_v28 = vpack.c.bf16 %v31_v24, %v37_v25 }
   0x9   :  { %423 = vmatprep.subr.bf16.mxu1 %v448_v5  ;;  %415 = vmatprep.mubr.msk.bf16.mxu0 %vm95_vm1, %v61_v14  ;;  %v51_v23 = vpack.c.bf16 %v28_v20, %v36_v21  ;;  %v230_v30 = vpack.c.bf16 %v49_v18, %v41_v26  ;;  %v231_v37 = vpack.c.bf16 %v50_v36, %v44_v35 }
   0xb   :  { %412 = vmatpush3.bf16.msra.mxu0 %v447_v4  ;;  %427 = vmatprep.mubr.msk.bf16.mxu1 %vm95_vm1, %v51_v23 }
   0xc   :  { %424 = vmatpush3.bf16.msra.mxu1 %v448_v5  ;;  %413 = vmatprep.subr.bf16.mxu0 %v449_v6 }
   0xd   :  { %425 = vmatprep.subr.bf16.mxu1 %v450_v7 }
   0xf   :  { %414 = vmatpush3.bf16.msra.mxu0 %v449_v6 }
  0x10   :  { %426 = vmatpush3.bf16.msra.mxu1 %v450_v7  ;;  %431 = vmatprep.subr.bf16.mxu0 %v451_v22 }
  0x12   :  { %416 = vmatmul.mubr.msk.bf16.vlgmr.msra.gmra.mxu0 %vm95_vm1, %v62_v27 }
  0x13   :  { %428 = vmatmul.mubr.msk.bf16.vlgmr.msra.gmra.mxu1 %vm95_vm1, %v52_v28  ;;  %432 = vmatpush3.bf16.msra.mxu0 %v451_v22 }
  0x14   :  { %433 = vmatprep.subr.bf16.mxu0 %v452_v29  ;;  %439 = vmatprep.mubr.msk.bf16.mxu0 %vm95_vm1, %v230_v30 }
  0x17   :  { %434 = vmatpush3.bf16.msra.mxu0 %v452_v29 }
  0x18   :  { %435 = vmatprep.subr.bf16.mxu0 %v453_v31 }
  0x1b   :  { %436 = vmatpush3.bf16.msra.mxu0 %v453_v31 }
  0x1c   :  { %437 = vmatprep.subr.bf16.mxu0 %v454_v34 }
  0x1f   :  { %438 = vmatpush3.bf16.msra.mxu0 %v454_v34 }
  0x22   :  { %440 = vmatmul.mubr.msk.bf16.vlgmr.msra.gmra.mxu0 %vm95_vm1, %v231_v37 }
  0xd2   :  { %v417_v38 = vpop.f32.mrf.mxu0 }
  0xd3   :  { %v429_v39 = vpop.f32.mrf.mxu1 }
  0xd4   :  { %v136_v40 = vpop.f32.mrf.mxu0  ;;  %v224_v45 = vadd.f32 %v429_v39, %v417_v38 }
  0xd5   :  { %v215_v41 = vpop.f32.mrf.mxu1 }
  0xd6   :  { %v418_v42 = vpop.f32.mrf.mxu0  ;;  %v216_v48 = vadd.f32 %v215_v41, %v136_v40 }
  0xd7   :  { %v430_v43 = vpop.f32.mrf.mxu1 }
  0xd8   :  { %v139_v44 = vpop.f32.mrf.mxu0  ;;  %v227_v52 = vadd.f32 %v430_v43, %v418_v42 }
  0xd9   :  { %v218_v50 = vpop.f32.mrf.mxu1 }
  0xda   :  { %v219_v56 = vadd.f32 %v218_v50, %v139_v44 }
  0xe2   :  { %v441_v46 = vpop.f32.mrf.mxu0 }
  0xe3   :  { %v321_v49 = vadd.f32 %v441_v46, %v224_v45 }
  0xe4   :  { %v304_v51 = vpop.f32.mrf.mxu0 }
  0xe5   :  { %v332_v53 = vadd.f32 %v388_v47, %v321_v49  ;;  %v319_v54 = vadd.f32 %v304_v51, %v216_v48 }
  0xe6   :  { %v442_v55 = vpop.f32.mrf.mxu0 }
  0xe7   :  { %360 = vst [vmem:[%s564_s3 + $0x10] sm:$0xff] %v332_v53  ;;  %v330_v57 = vadd.f32 %v388_v47, %v319_v54  ;;  %v322_v58 = vadd.f32 %v442_v55, %v227_v52  ;;  %v345_v2 = vmul.f32 %v332_v53, %v332_v53 }
  0xe8   :  { %v307_v59 = vpop.f32.mrf.mxu0 }
  0xe9   :  { %358 = vst [vmem:[%s564_s3] sm:$0xff] %v330_v57  ;;  %v333_v60 = vadd.f32 %v388_v47, %v322_v58  ;;  %v320_v61 = vadd.f32 %v307_v59, %v219_v56  ;;  %v343_v63 = vmul.f32 %v330_v57, %v330_v57 }
  0xeb   :  { %361 = vst [vmem:[%s564_s3 + $0x18] sm:$0xff] %v333_v60  ;;  %v331_v62 = vadd.f32 %v388_v47, %v320_v61  ;;  %v346_v5 = vmul.f32 %v333_v60, %v333_v60 }
  0xed   :  { %v334_v0 = vadd.f32 %v331_v62, %v330_v57  ;;  %v344_v1 = vmul.f32 %v331_v62, %v331_v62  ;;  %359 = vst [vmem:[%s564_s3 + $0x8] sm:$0xff] %v331_v62 }
  0xef   :  { %v335_v3 = vadd.f32 %v334_v0, %v332_v53  ;;  %v347_v4 = vadd.f32 %v344_v1, %v343_v63 }
  0xf1   :  { %v336_v6 = vadd.f32 %v335_v3, %v333_v60  ;;  %v348_v7 = vadd.f32 %v347_v4, %v345_v2 }
  0xf3   :  { %v337_v8 = vrot.slane %v336_v6, 4  ;;  %v349_v9 = vadd.f32 %v348_v7, %v346_v5 }
  0xf5   :  { %v338_v10 = vadd.f32 %v337_v8, %v336_v6  ;;  %v350_v11 = vrot.slane %v349_v9, 4 }
  0xf7   :  { %v339_v12 = vrot.slane %v338_v10, 2  ;;  %v351_v13 = vadd.f32 %v350_v11, %v349_v9 }
  0xf9   :  { %v340_v14 = vadd.f32 %v339_v12, %v338_v10  ;;  %v352_v15 = vrot.slane %v351_v13, 2 }
  0xfb   :  { %v341_v16 = vrot.slane %v340_v14, 1  ;;  %v353_v17 = vadd.f32 %v352_v15, %v351_v13 }
  0xfd   :  { %v354_v18 = vrot.slane %v353_v17, 1  ;;  %v342_v19 = vadd.f32 %v341_v16, %v340_v14 }
  0xff   :  { %v355_v20 = vadd.f32 %v354_v18, %v353_v17 }
 0x101   :  { %v356_v21 = vsel %vm25_vm2, %v342_v19, %v355_v20 }
 0x102   :  { %357 = vst [vmem:[%s565_s4] sm:$0x3] %v356_v21 }

// kernel: conv_block.3
= control target key start
LH: loop header
LB: loop body
LE: loop exit
PB: predicated region body
PF: predicated region fallthrough
CT: control target
= control target key end

     0   :  { %vm57_vm0 = vcmask 1040384   ;;  %vm70_vm2 = vcmask 1046528   ;;  %vm546_vm3 = vmmov 1   ;;  %s705_s3 = inlined_call_operand.vmem [shape: bf16[384,128], index: 3, kind: input, shape index: {}]   ;;  %s706_s0 = inlined_call_operand.vmem [shape: f32[2,16,128], index: 0, kind: input, shape index: {}]   ;;  %s707_s1 = inlined_call_operand.vmem [shape: f32[1,128], index: 1, kind: input, shape index: {}]   ;;  %s708_s2 = inlined_call_operand.vmem [shape: f32[1,128], index: 2, kind: input, shape index: {}]   ;;  %s709_s4 = inlined_call_operand.vmem [shape: f32[1,128], index: 4, kind: input, shape index: {}]   ;;  %s710_s5 = inlined_call_operand.vmem [shape: f32[2,16,128], index: 5, kind: output, shape index: {0}]   ;;  %s711_s6 = inlined_call_operand.vmem [shape: f32[1,2,128], index: 6, kind: output, shape index: {1}]  }
   0x1   :  { %v522_v0 = vld [vmem:[%s705_s3 + $0x78] sm:$0xff]   ;;  %v525_v3 = vld [vmem:[%s705_s3 + $0x70] sm:$0xff]   ;;  %v528_v6 = vld [vmem:[%s705_s3 + $0x68] sm:$0xff]  }
   0x2   :  { %v523_v1 = vld [vmem:[%s705_s3 + $0x38] sm:$0xff]   ;;  %463 = vmatprep.subr.bf16.mxu0 %v522_v0  ;;  %v526_v4 = vld [vmem:[%s705_s3 + $0x30] sm:$0xff]   ;;  %v529_v7 = vld [vmem:[%s705_s3 + $0x28] sm:$0xff]  }
   0x3   :  { %v524_v2 = vld [vmem:[%s705_s3 + $0xb8] sm:$0xff]   ;;  %464 = vmatpush3.bf16.msra.mxu0 %v523_v1  ;;  %v527_v5 = vld [vmem:[%s705_s3 + $0xb0] sm:$0xff]   ;;  %v530_v8 = vld [vmem:[%s705_s3 + $0xa8] sm:$0xff]  }
   0x4   :  { %501 = vmatprep.subr.bf16.mxu1 %v524_v2  ;;  %465 = vmatprep.subr.bf16.mxu0 %v525_v3  ;;  %v531_v9 = vld [vmem:[%s705_s3 + $0x60] sm:$0xff]   ;;  %v534_v12 = vld [vmem:[%s705_s3 + $0x58] sm:$0xff]   ;;  %v537_v15 = vld [vmem:[%s705_s3 + $0x50] sm:$0xff]  }
   0x5   :  { %502 = vmatpush3.bf16.msra.mxu1 %v524_v2  ;;  %v532_v10 = vld [vmem:[%s705_s3 + $0x20] sm:$0xff]   ;;  %v536_v13 = vld [vmem:[%s705_s3 + $0x98] sm:$0xff]   ;;  %v539_v16 = vld [vmem:[%s705_s3 + $0x90] sm:$0xff]  }
   0x6   :  { %503 = vmatprep.subr.bf16.mxu1 %v527_v5  ;;  %v533_v11 = vld [vmem:[%s705_s3 + $0xa0] sm:$0xff]   ;;  %v535_v14 = vld [vmem:[%s705_s3 + $0x18] sm:$0xff]   ;;  %v538_v17 = vld [vmem:[%s705_s3 + $0x10] sm:$0xff]  }
   0x7   :  { %466 = vmatpush3.bf16.msra.mxu0 %v526_v4  ;;  %v540_v18 = vld [vmem:[%s705_s3 + $0x48] sm:$0xff]   ;;  %v543_v21 = vld [vmem:[%s705_s3 + $0x40] sm:$0xff]   ;;  %v27_v26 = vld [vmem:[%s706_s0 + $0x10] sm:$0xff] }
   0x8   :  { %467 = vmatprep.subr.bf16.mxu0 %v528_v6  ;;  %v541_v19 = vld [vmem:[%s705_s3 + $0x8] sm:$0xff]   ;;  %v422_v22 = vld [vmem:[%s707_s1] ss:$0 sm:$0xff]  ;;  %v28_v31 = vld [vmem:[%s706_s0 + $0x18] sm:$0xff] }
   0x9   :  { %504 = vmatpush3.bf16.msra.mxu1 %v527_v5  ;;  %v542_v20 = vld [vmem:[%s705_s3 + $0x88] sm:$0xff]   ;;  %v423_v23 = vld [vmem:[%s708_s2] ss:$0 sm:$0xff]  ;;  %v37_v30 = vmul.f32 %v422_v22, %v27_v26  ;;  %v38_v34 = vmul.f32 %v422_v22, %v28_v31  ;;  %vm449_vm1 = vmneg %vm57_vm0 }
   0xa   :  { %505 = vmatprep.subr.bf16.mxu1 %v530_v8  ;;  %v25_v24 = vld [vmem:[%s706_s0] sm:$0xff]  ;;  %v26_v25 = vld [vmem:[%s706_s0 + $0x8] sm:$0xff]  ;;  %vm673_vm4 = vmpackc.low %vm546_vm3, %vm449_vm1 }
   0xb   :  { %468 = vmatpush3.bf16.msra.mxu0 %v529_v7  ;;  %v35_v27 = vmul.f32 %v422_v22, %v25_v24  ;;  %v545_v28 = vld [vmem:[%s705_s3 + $0x80] sm:$0xff]   ;;  %v36_v29 = vmul.f32 %v422_v22, %v26_v25  ;;  %v47_v36 = vadd.f32 %v423_v23, %v37_v30  ;;  %v48_v38 = vadd.f32 %v423_v23, %v38_v34  ;;  %vm457_vm5 = vmpackc.low %vm70_vm2, %vm546_vm3 }
   0xc   :  { %469 = vmatprep.subr.bf16.mxu0 %v531_v9  ;;  %v544_v32 = vld [vmem:[%s705_s3] sm:$0xff]  }
   0xd   :  { %506 = vmatpush3.bf16.msra.mxu1 %v530_v8  ;;  %v45_v33 = vadd.f32 %v423_v23, %v35_v27  ;;  %v46_v35 = vadd.f32 %v423_v23, %v36_v29  ;;  %v51_v40 = vmax.f32 %v47_v36, 0.0  ;;  %v52_v42 = vmax.f32 %v48_v38, 0.0  ;;  %v424_v0 = vld [vmem:[%s709_s4] ss:$0 sm:$0xff] }
   0xe   :  { %507 = vmatprep.subr.bf16.mxu1 %v533_v11 }
   0xf   :  { %470 = vmatpush3.bf16.msra.mxu0 %v532_v10  ;;  %v49_v37 = vmax.f32 %v45_v33, 0.0  ;;  %v50_v39 = vmax.f32 %v46_v35, 0.0  ;;  %v74_v47 = vrot.slane %v51_v40, 1  ;;  %v75_v49 = vrot.slane %v52_v42, 1 }
  0x10   :  { %471 = vmatprep.subr.bf16.mxu0 %v534_v12  ;;  %v87_v50 = vpack.c.bf16 %v52_v42, %v51_v40  ;;  %v61_v53 = vrot.slane %v51_v40, 7  ;;  %v62_v54 = vrot.slane %v52_v42, 7 }
  0x11   :  { %508 = vmatpush3.bf16.msra.mxu1 %v533_v11  ;;  %v58_v41 = vrot.slane %v49_v37, 7  ;;  %v71_v43 = vrot.slane %v49_v37, 1  ;;  %v59_v44 = vrot.slane %v50_v39, 7  ;;  %v84_v45 = vpack.c.bf16 %v50_v39, %v49_v37 }
  0x12   :  { %509 = vmatprep.subr.bf16.mxu1 %v536_v13  ;;  %v72_v46 = vrot.slane %v50_v39, 1  ;;  %v76_v56 = vsel %vm70_vm2, %v74_v47, %v75_v49  ;;  %v63_v59 = vsel %vm57_vm0, %v61_v53, %v62_v54 }
  0x13   :  { %472 = vmatpush3.bf16.msra.mxu0 %v535_v14  ;;  %320 = vmatprep.mubr.bf16.mxu0 %v84_v45  ;;  %v60_v51 = vsel %vm57_vm0, %v58_v41, %v59_v44  ;;  %v461_v58 = vpack.c.bf16 %v75_v49, %v76_v56  ;;  %v455_v60 = vpack.c.bf16 %v63_v59, %v61_v53 }
  0x14   :  { %473 = vmatprep.subr.bf16.mxu0 %v537_v15  ;;  %v73_v52 = vsel %vm70_vm2, %v71_v43, %v72_v46  ;;  %v451_v55 = vpack.c.bf16 %v60_v51, %v58_v41 }
  0x15   :  { %510 = vmatpush3.bf16.msra.mxu1 %v536_v13  ;;  %v458_v57 = vpack.c.bf16 %v72_v46, %v73_v52 }
  0x16   :  { %511 = vmatprep.subr.bf16.mxu1 %v539_v16 }
  0x17   :  { %474 = vmatpush3.bf16.msra.mxu0 %v538_v17  ;;  %517 = vmatprep.mubr.msk.bf16.mxu1 %vm457_vm5, %v458_v57 }
  0x18   :  { %475 = vmatprep.subr.bf16.mxu0 %v540_v18 }
  0x19   :  { %512 = vmatpush3.bf16.msra.mxu1 %v539_v16 }
  0x1a   :  { %513 = vmatprep.subr.bf16.mxu1 %v542_v20 }
  0x1b   :  { %476 = vmatpush3.bf16.msra.mxu0 %v541_v19 }
  0x1c   :  { %477 = vmatprep.subr.bf16.mxu0 %v543_v21 }
  0x1d   :  { %514 = vmatpush3.bf16.msra.mxu1 %v542_v20 }
  0x1e   :  { %515 = vmatprep.subr.bf16.mxu1 %v545_v28 }
  0x1f   :  { %478 = vmatpush3.bf16.msra.mxu0 %v544_v32 }
  0x21   :  { %516 = vmatpush3.bf16.msra.mxu1 %v545_v28 }
  0x22   :  { %452 = vmatmul.mubr.msk.bf16.vlgmr.msra.gmra.mxu0 %vm673_vm4, %v451_v55 }
  0x23   :  { %328 = vmatprep.mubr.bf16.mxu0 %v87_v50 }
  0x24   :  { %518 = vmatmul.mubr.msk.bf16.vlgmr.msra.gmra.mxu1 %vm457_vm5, %v461_v58 }
  0x2a   :  { %456 = vmatmul.mubr.msk.bf16.gmra.mxu0 %vm673_vm4, %v455_v60 }
  0xe2   :  { %v479_v61 = vpop.f32.mrf.mxu0 }
  0xe4   :  { %v519_v62 = vpop.f32.mrf.mxu1  ;;  %v480_v63 = vpop.f32.mrf.mxu0 }
  0xe5   :  { %v481_v1 = vadd.f32 %v480_v63, %v479_v61 }
  0xe6   :  { %v371_v2 = vpop.f32.mrf.mxu1  ;;  %v482_v3 = vpop.f32.mrf.mxu0 }
  0xe7   :  { %v323_v4 = vadd.f32 %v481_v1, %v424_v0 }
  0xe8   :  { %v483_v5 = vpop.f32.mrf.mxu0  ;;  %v520_v6 = vpop.f32.mrf.mxu1 }
  0xe9   :  { %v372_v7 = vadd.f32 %v371_v2, %v323_v4  ;;  %v484_v8 = vadd.f32 %v483_v5, %v482_v3 }
  0xea   :  { %v485_v9 = vpop.f32.mrf.mxu0  ;;  %v374_v11 = vpop.f32.mrf.mxu1 }
  0xeb   :  { %410 = vst [vmem:[%s710_s5] sm:$0xff] %v372_v7  ;;  %v326_v10 = vadd.f32 %v484_v8, %v424_v0  ;;  %v395_v21 = vmul.f32 %v372_v7, %v372_v7 }
  0xec   :  { %v486_v12 = vpop.f32.mrf.mxu0 }
  0xed   :  { %v375_v13 = vadd.f32 %v374_v11, %v326_v10  ;;  %v487_v14 = vadd.f32 %v486_v12, %v485_v9 }
  0xee   :  { %v488_v15 = vpop.f32.mrf.mxu0 }
  0xef   :  { %411 = vst [vmem:[%s710_s5 + $0x8] sm:$0xff] %v375_v13  ;;  %v331_v16 = vadd.f32 %v487_v14, %v424_v0  ;;  %v396_v18 = vmul.f32 %v375_v13, %v375_v13  ;;  %v386_v22 = vadd.f32 %v375_v13, %v372_v7 }
  0xf0   :  { %v489_v17 = vpop.f32.mrf.mxu0 }
  0xf1   :  { %v380_v19 = vadd.f32 %v519_v62, %v331_v16  ;;  %v490_v20 = vadd.f32 %v489_v17, %v488_v15  ;;  %v399_v25 = vadd.f32 %v396_v18, %v395_v21 }
  0xf3   :  { %v397_v23 = vmul.f32 %v380_v19, %v380_v19  ;;  %412 = vst [vmem:[%s710_s5 + $0x10] sm:$0xff] %v380_v19  ;;  %v334_v24 = vadd.f32 %v490_v20, %v424_v0  ;;  %v387_v26 = vadd.f32 %v386_v22, %v380_v19 }
  0xf5   :  { %v383_v27 = vadd.f32 %v520_v6, %v334_v24  ;;  %v400_v28 = vadd.f32 %v399_v25, %v397_v23 }
  0xf7   :  { %v388_v29 = vadd.f32 %v387_v26, %v383_v27  ;;  %v398_v30 = vmul.f32 %v383_v27, %v383_v27  ;;  %413 = vst [vmem:[%s710_s5 + $0x18] sm:$0xff] %v383_v27 }
  0xf9   :  { %v389_v31 = vrot.slane %v388_v29, 4  ;;  %v401_v32 = vadd.f32 %v400_v28, %v398_v30 }
  0xfb   :  { %v390_v33 = vadd.f32 %v389_v31, %v388_v29  ;;  %v402_v34 = vrot.slane %v401_v32, 4 }
  0xfd   :  { %v391_v35 = vrot.slane %v390_v33, 2  ;;  %v403_v36 = vadd.f32 %v402_v34, %v401_v32 }
  0xff   :  { %v392_v37 = vadd.f32 %v391_v35, %v390_v33  ;;  %v404_v38 = vrot.slane %v403_v36, 2 }
 0x101   :  { %v393_v39 = vrot.slane %v392_v37, 1  ;;  %v405_v40 = vadd.f32 %v404_v38, %v403_v36 }
 0x103   :  { %v406_v41 = vrot.slane %v405_v40, 1  ;;  %v394_v42 = vadd.f32 %v393_v39, %v392_v37 }
 0x105   :  { %v407_v43 = vadd.f32 %v406_v41, %v405_v40 }
 0x107   :  { %v408_v44 = vsel %vm57_vm0, %v394_v42, %v407_v43 }
 0x108   :  { %409 = vst [vmem:[%s711_s6] sm:$0x3] %v408_v44 }

</bundles_post_ra>
